<compile_context>
chip_gen: v5e
topology: v5e:2x2
jax: 0.10.0
libtpu: 0.0.40
codegen_flags: <defaults>
</compile_context>

<pallas_src>
import functools
import math

import jax
import jax.numpy as jnp
from jax.experimental import pallas as pl
from jax.experimental.pallas import tpu as pltpu


_SQRT_2_OVER_PI = math.sqrt(2.0 / math.pi)


def _round_up(x, m):
    return ((x + m - 1) // m) * m


# --------------------------------------------------------------------------- #
# Hardware detection (generation-aware limits)
# --------------------------------------------------------------------------- #

_HW_CACHE = None


def _detect_hw():
    vmem_q = None
    try:
        vmem_q = int(getattr(pltpu.get_tpu_info(), "vmem_capacity_bytes", 0)) or None
    except Exception:
        vmem_q = None
    kind = ""
    try:
        kind = jax.devices()[0].device_kind.lower()
    except Exception:
        pass

    if "v5" in kind:
        gen = 5
    elif "v6" in kind:
        gen = 6
    elif "7" in kind:
        gen = 7
    else:
        # Unknown: be conservative (v7x-like) unless a big VMEM was reported.
        gen = 6 if (vmem_q is not None and vmem_q > 80 * 2**20) else 7

    if gen == 5:
        return dict(gen=5, vmem_phys=128 * 2**20, budget=72 * 2**20, n_align=128,
                    tm_cap=512, tn_cap=1024,
                    k_res_cap_packed=8192, k_res_cap_f32=4096, par_cores=1)
    if gen == 6:
        return dict(gen=6, vmem_phys=128 * 2**20, budget=88 * 2**20, n_align=256,
                    tm_cap=1024, tn_cap=2048,
                    k_res_cap_packed=8192, k_res_cap_f32=4096, par_cores=1)
    # v7x: 64 MiB VMEM per TensorCore, 2 TensorCores per chip.
    return dict(gen=7, vmem_phys=64 * 2**20, budget=40 * 2**20, n_align=256,
                tm_cap=512, tn_cap=2048,
                k_res_cap_packed=4096, k_res_cap_f32=2048, par_cores=2)


def _hw():
    global _HW_CACHE
    if _HW_CACHE is None:
        _HW_CACHE = _detect_hw()
    return _HW_CACHE


# --------------------------------------------------------------------------- #
# Tiling heuristics
# --------------------------------------------------------------------------- #

def _pick_tile(dim, cap, align, floor):
    """Whole (aligned) dim if it fits under cap; else the largest aligned tile
    <= cap with <=12.5% padding, else the minimum-padding tile >= floor."""
    dim_a = _round_up(dim, align)
    if dim_a <= cap:
        return dim_a
    cap_a = (cap // align) * align
    floor = max(align, min(_round_up(floor, align), cap_a))
    best_t = cap_a
    best_pad = _round_up(dim_a, cap_a) - dim_a
    t = cap_a
    while t >= floor:
        pad = _round_up(dim_a, t) - dim_a
        if pad * 8 <= dim_a:          # <= 12.5% waste: take the biggest such tile
            return t
        if pad < best_pad:
            best_t, best_pad = t, pad
        t -= align
    return best_t


def _footprint(tm, tn, tk, *, k_split, out_is_f32, in_itemsize, out_itemsize):
    f = 2 * tm * tk * in_itemsize        # x tiles (double-buffered)
    f += 2 * tk * tn * in_itemsize       # packed (K, N) weight tiles
    f += 2 * tm * tn * out_itemsize      # output tiles
    f += 2 * tn * 4                      # f32 bias tile
    f += 3 * tm * tn * 4                 # GELU epilogue f32 temporaries
    if k_split and not out_is_f32:
        f += tm * tn * 4                 # f32 accumulator scratch
    return f


def _choose_config(N, K, in_itemsize, out_itemsize, out_is_f32):
    hw = _hw()
    n_align = hw["n_align"]
    budget = hw["budget"]
    tm_cap = hw["tm_cap"]

    tn = _pick_tile(N, hw["tn_cap"], n_align, floor=max(n_align, 256))
    kp128 = _round_up(K, 128)
    k_res_cap = hw["k_res_cap_packed"] if in_itemsize < 4 else hw["k_res_cap_f32"]

    # Prefer keeping the whole K reduction resident (no k grid axis, no
    # accumulator, no per-k-step overhead).
    if kp128 <= k_res_cap:
        tn_r = tn
        while True:
            fp = _footprint(tm_cap, tn_r, kp128, k_split=False, out_is_f32=out_is_f32,
                            in_itemsize=in_itemsize, out_itemsize=out_itemsize)
            if fp <= budget:
                return dict(tn=tn_r, tk=kp128, tm_cap=tm_cap)
            if tn_r <= n_align:
                break
            tn_r = max(n_align, (tn_r // 2 // n_align) * n_align)

    # K-split path.
    if hw["gen"] == 7:
        tk_cap = 1024 if in_itemsize < 4 else 512
    else:
        tk_cap = 2048 if in_itemsize < 4 else 1024
    tk = _pick_tile(K, tk_cap, 128, floor=min(kp128, 512))
    tn_s, tm_c = tn, tm_cap
    while _footprint(tm_c, tn_s, tk, k_split=True, out_is_f32=out_is_f32,
                     in_itemsize=in_itemsize, out_itemsize=out_itemsize) > budget:
        if tk > 256:
            tk = max(128, (tk // 2 // 128) * 128)
        elif tn_s > n_align:
            tn_s = max(n_align, (tn_s // 2 // n_align) * n_align)
        elif tm_c > 64:
            tm_c = max(8, tm_c // 2)
        else:
            break
    return dict(tn=tn_s, tk=tk, tm_cap=tm_c)


def _choose_tm(M, tm_cap, m_align, n_blocks):
    hw = _hw()
    floor = min(_round_up(M, m_align), _round_up(256, m_align))
    tm = _pick_tile(M, tm_cap, m_align, floor)
    # v7x megacore: make sure the "parallel" (M, N) grid has >= 2 steps so both
    # TensorCores get work.
    if hw["par_cores"] > 1 and M > m_align:
        Mp = _round_up(M, tm)
        if (Mp // tm) * n_blocks < hw["par_cores"]:
            tm = _round_up(-(-M // hw["par_cores"]), m_align)
    return tm


# --------------------------------------------------------------------------- #
# Kernels
# --------------------------------------------------------------------------- #

def _new_gelu_f32(y):
    # 0.5*y*(1 + tanh(sqrt(2/pi)*(y + 0.044715*y^3)))   with y + a*y^3 = y*(1 + a*y^2)
    inner = _SQRT_2_OVER_PI * y * (1.0 + 0.044715 * (y * y))
    return 0.5 * y * (1.0 + jnp.tanh(inner))


def _kernel_k_resident(x_ref, w_ref, b_ref, o_ref):
    # Whole K resident: single MXU matmul, fused bias + new-GELU, single store.
    y = jnp.dot(x_ref[...], w_ref[...], preferred_element_type=jnp.float32)
    y = y + b_ref[...]
    o_ref[...] = _new_gelu_f32(y).astype(o_ref.dtype)


def _kernel_k_split_f32out(x_ref, w_ref, b_ref, o_ref):
    # f32 output: accumulate directly into the revisited (VMEM-resident) output
    # block — no scratch accumulator, no epilogue VMEM->VMEM copy.
    k = pl.program_id(2)

    @pl.when(k == 0)
    def _():
        o_ref[...] = jnp.zeros_like(o_ref)

    o_ref[...] += jnp.dot(x_ref[...], w_ref[...], preferred_element_type=jnp.float32)

    @pl.when(k == pl.num_programs(2) - 1)
    def _():
        y = o_ref[...] + b_ref[...]
        o_ref[...] = _new_gelu_f32(y).astype(o_ref.dtype)


def _kernel_k_split_acc(x_ref, w_ref, b_ref, o_ref, acc_ref):
    # Narrow (e.g. bf16) output: keep an f32 accumulator scratch.
    k = pl.program_id(2)

    @pl.when(k == 0)
    def _():
        acc_ref[...] = jnp.zeros_like(acc_ref)

    acc_ref[...] += jnp.dot(x_ref[...], w_ref[...], preferred_element_type=jnp.float32)

    @pl.when(k == pl.num_programs(2) - 1)
    def _():
        y = acc_ref[...] + b_ref[...]
        o_ref[...] = _new_gelu_f32(y).astype(o_ref.dtype)


# --------------------------------------------------------------------------- #
# Wrapper
# --------------------------------------------------------------------------- #

@functools.partial(jax.jit, static_argnames=("n_out", "tn", "tk", "tm_cap", "k_split"))
def _linear_new_gelu_packed(x, w_packed, b_packed, *, n_out, tn, tk, tm_cap, k_split):
    """x: (..., K); w_packed: (Kp, Np) pre-transposed/padded; b_packed: (1, Np) f32."""
    orig_shape = x.shape
    K = orig_shape[-1]
    Kp, Np = w_packed.shape
    assert Kp >= K and Np % tn == 0 and Kp % tk == 0

    if x.dtype != w_packed.dtype:
        x = x.astype(w_packed.dtype)
    out_dtype = x.dtype
    x2d = x.reshape(-1, K)
    M = x2d.shape[0]

    in_itemsize = jnp.dtype(w_packed.dtype).itemsize
    out_itemsize = jnp.dtype(out_dtype).itemsize
    out_is_f32 = out_dtype == jnp.float32
    m_align = {4: 8, 2: 16, 1: 32}.get(out_itemsize, 8)

    n_blocks = Np // tn
    tm = _choose_tm(M, tm_cap, m_align, n_blocks)
    Mp = _round_up(M, tm)

    # Activation padding only (small); zero K padding contributes nothing.
    if (Mp, Kp) != (M, K):
        x2d = jnp.pad(x2d, ((0, Mp - M), (0, Kp - K)))

    hw = _hw()
    fp = _footprint(tm, tn, tk, k_split=k_split, out_is_f32=out_is_f32,
                    in_itemsize=in_itemsize, out_itemsize=out_itemsize)
    vmem_limit = int(min(int(hw["vmem_phys"] * 0.82),
                         max(fp + 16 * 2**20, 32 * 2**20)))
    cost = pl.CostEstimate(
        flops=2 * Mp * Np * Kp,
        transcendentals=Mp * Np,
        bytes_accessed=(Mp * Kp + Kp * Np) * in_itemsize + Np * 4 + Mp * Np * out_itemsize,
    )

    if k_split:
        grid = (Mp // tm, n_blocks, Kp // tk)
        in_specs = [
            pl.BlockSpec((tm, tk), lambda i, j, k: (i, k)),   # x tile
            pl.BlockSpec((tk, tn), lambda i, j, k: (k, j)),   # packed (K, N) weight tile
            pl.BlockSpec((1, tn), lambda i, j, k: (0, j)),    # bias tile (f32)
        ]
        out_specs = pl.BlockSpec((tm, tn), lambda i, j, k: (i, j))
        dims = ("parallel", "parallel", "arbitrary")
        if out_is_f32:
            kernel, scratch = _kernel_k_split_f32out, []
        else:
            kernel, scratch = _kernel_k_split_acc, [pltpu.VMEM((tm, tn), jnp.float32)]
    else:
        grid = (Mp // tm, n_blocks)
        in_specs = [
            pl.BlockSpec((tm, tk), lambda i, j: (i, 0)),
            pl.BlockSpec((tk, tn), lambda i, j: (0, j)),
            pl.BlockSpec((1, tn), lambda i, j: (0, j)),
        ]
        out_specs = pl.BlockSpec((tm, tn), lambda i, j: (i, j))
        dims = ("parallel", "parallel")
        kernel, scratch = _kernel_k_resident, []

    out = pl.pallas_call(
        kernel,
        out_shape=jax.ShapeDtypeStruct((Mp, Np), out_dtype),
        grid_spec=pltpu.PrefetchScalarGridSpec(
            num_scalar_prefetch=0,
            grid=grid,
            in_specs=in_specs,
            out_specs=out_specs,
            scratch_shapes=scratch,
        ),
        compiler_params=pltpu.CompilerParams(
            dimension_semantics=dims,
            vmem_limit_bytes=vmem_limit,
        ),
        cost_estimate=cost,
    )(x2d, w_packed, b_packed)

    if (Mp, Np) != (M, n_out):
        out = out[:M, :n_out]
    return out.reshape(*orig_shape[:-1], n_out)


class LinearNewGelu:
    """Fused new_gelu(x @ W.T + b).  W in PyTorch nn.Linear (out, in) layout.

    The weight is packed (transposed to (K, N) and tile-padded) ONCE at
    construction, so repeated calls do no weight-sized HBM copies.
    """

    def __init__(self, weight, bias=None, *, tn=None, tk=None, tm_cap=None):
        weight = jnp.asarray(weight)
        N, K = weight.shape
        self.n_out = int(N)

        in_itemsize = jnp.dtype(weight.dtype).itemsize
        out_is_f32 = weight.dtype == jnp.float32
        cfg = _choose_config(N, K, in_itemsize, in_itemsize, out_is_f32)
        self.tn = int(tn or cfg["tn"])
        self.tk = int(tk or cfg["tk"])
        self.tm_cap = int(tm_cap or cfg["tm_cap"])
        assert self.tn % 128 == 0 and self.tk % 128 == 0

        Kp = _round_up(K, self.tk)
        Np = _round_up(N, self.tn)
        self.k_split = (Kp // self.tk) > 1

        w = weight
        if (Np, Kp) != (N, K):
            w = jnp.pad(w, ((0, Np - N), (0, Kp - K)))
        # (K, N) layout: MXU consumes the RHS natively (no per-tile transpose).
        self.w_packed = jnp.transpose(w)          # (Kp, Np)
        b = jnp.zeros((N,), jnp.float32) if bias is None \
            else jnp.asarray(bias).astype(jnp.float32)
        if Np != N:
            b = jnp.pad(b, (0, Np - N))
        self.b_packed = b.reshape(1, Np)

    def __call__(self, x):
        return _linear_new_gelu_packed(
            x, self.w_packed, self.b_packed,
            n_out=self.n_out, tn=self.tn, tk=self.tk,
            tm_cap=self.tm_cap, k_split=self.k_split)


def linear_new_gelu(x, weight, bias=None, **tile_overrides):
    # NOTE: packs (transposes/pads) the weight on every call; for repeated use
    # construct a LinearNewGelu once and reuse it.
    return LinearNewGelu(weight, bias, **tile_overrides)(x)


def _reference(x, weight, bias):
    y = jnp.einsum("...k,nk->...n", x, weight) + bias
    c = math.sqrt(2.0 / math.pi)
    return 0.5 * y * (1.0 + jnp.tanh(c * (y + 0.044715 * jnp.power(y, 3.0))))


if __name__ == "__main__":
    key = jax.random.PRNGKey(0)
    kx, kw, kb, kx2, kw2, kb2, kx3, kw3, kb3 = jax.random.split(key, 9)

    # Case 1: small f32 shapes from the module's forward (batch, seq, hidden) —
    # exercises the K-resident (no reduction grid axis) kernel.
    batch, seq, in_features, out_features = 2, 8, 32, 64
    x = jax.random.normal(kx, (batch, seq, in_features), dtype=jnp.float32)
    w = jax.random.normal(kw, (out_features, in_features), dtype=jnp.float32) * 0.05
    b = jax.random.normal(kb, (out_features,), dtype=jnp.float32) * 0.01

    fused = LinearNewGelu(w, b)
    out = jax.block_until_ready(fused(x))
    ref = _reference(x, w, b)
    assert out.shape == (batch, seq, out_features)
    assert jnp.allclose(out, ref, atol=1e-5, rtol=1e-5), "mismatch (K-resident f32)"

    # Case 2: force the K-split path (f32 accumulates directly in the output block).
    in2, out2 = 256, 128
    x2 = jax.random.normal(kx2, (batch, seq, in2), dtype=jnp.float32)
    w2 = jax.random.normal(kw2, (out2, in2), dtype=jnp.float32) * 0.05
    b2 = jax.random.normal(kb2, (out2,), dtype=jnp.float32) * 0.01
    fused2 = LinearNewGelu(w2, b2, tk=128)
    out2_v = jax.block_until_ready(fused2(x2))
    ref2 = _reference(x2, w2, b2)
    assert out2_v.shape == (batch, seq, out2)
    assert jnp.allclose(out2_v, ref2, atol=1e-5, rtol=1e-5), "mismatch (K-split f32)"

    # Case 3: ragged bf16 case — padded M/N/K, sublane-16 tiling, f32 scratch
    # accumulator in the K-split path.
    M3, in3, out3 = 260, 384, 320
    x3 = jax.random.normal(kx3, (M3, in3), dtype=jnp.float32).astype(jnp.bfloat16)
    w3 = (jax.random.normal(kw3, (out3, in3), dtype=jnp.float32) * 0.05).astype(jnp.bfloat16)
    b3 = jax.random.normal(kb3, (out3,), dtype=jnp.float32) * 0.01
    fused3 = LinearNewGelu(w3, b3, tk=128)
    out3_v = jax.block_until_ready(fused3(x3))
    ref3 = _reference(x3.astype(jnp.float32), w3.astype(jnp.float32), b3)
    assert out3_v.shape == (M3, out3)
    assert out3_v.dtype == jnp.bfloat16
    err = float(jnp.max(jnp.abs(out3_v.astype(jnp.float32) - ref3)))
    assert err < 5e-2, f"mismatch (K-split bf16), max err {err}"

    print("KERNEL_OK")
</pallas_src>

<mosaic_0001>
module attributes {stable_mosaic.version = 11 : i64} {
  func.func @_kernel_k_resident(%arg0: i32, %arg1: i32, %arg2: memref<8x128xf32, #tpu.memory_space<vmem>>, %arg3: memref<128x256xf32, #tpu.memory_space<vmem>>, %arg4: memref<1x256xf32, #tpu.memory_space<vmem>>, %arg5: memref<8x256xf32, #tpu.memory_space<vmem>>) attributes {dimension_semantics = [#tpu.dimension_semantics<parallel>, #tpu.dimension_semantics<parallel>], iteration_bounds = array<i64: 2, 1>, scalar_prefetch = 0 : i64, scratch_operands = 0 : i64, tpu.core_type = #tpu.core_type<tc>, window_params = [{transform_indices = @transform_0, window_bounds = array<i64: 8, 128>}, {transform_indices = @transform_1, window_bounds = array<i64: 128, 256>}, {transform_indices = @transform_2, window_bounds = array<i64: 1, 256>}, {transform_indices = @transform_3, window_bounds = array<i64: 8, 256>}]} {
    %c0 = arith.constant 0 : index
    %c0_0 = arith.constant 0 : index
    %0 = vector.load %arg2[%c0, %c0_0] : memref<8x128xf32, #tpu.memory_space<vmem>>, vector<8x128xf32>
    %c0_1 = arith.constant 0 : index
    %c0_2 = arith.constant 0 : index
    %1 = vector.load %arg3[%c0_1, %c0_2] : memref<128x256xf32, #tpu.memory_space<vmem>>, vector<128x256xf32>
    %cst = arith.constant dense<0.000000e+00> : vector<8x256xf32>
    %2 = tpu.matmul %0, %1, %cst {dimension_numbers = #tpu.dot_dimension_numbers<[1], [0], [0], [1], [0, 0, 1, 1], [], []>} : vector<8x128xf32>, vector<128x256xf32>, vector<8x256xf32> -> vector<8x256xf32>
    %c0_3 = arith.constant 0 : index
    %c0_4 = arith.constant 0 : index
    %3 = vector.load %arg4[%c0_3, %c0_4] : memref<1x256xf32, #tpu.memory_space<vmem>>, vector<1x256xf32>
    %4 = vector.broadcast %3 : vector<1x256xf32> to vector<8x256xf32>
    %5 = arith.addf %2, %4 : vector<8x256xf32>
    %cst_5 = arith.constant 0.797884583 : f32
    %6 = vector.broadcast %cst_5 : f32 to vector<8x256xf32>
    %7 = arith.mulf %6, %5 : vector<8x256xf32>
    %8 = arith.mulf %5, %5 : vector<8x256xf32>
    %cst_6 = arith.constant 4.471500e-02 : f32
    %9 = vector.broadcast %cst_6 : f32 to vector<8x256xf32>
    %10 = arith.mulf %9, %8 : vector<8x256xf32>
    %cst_7 = arith.constant 1.000000e+00 : f32
    %11 = vector.broadcast %cst_7 : f32 to vector<8x256xf32>
    %12 = arith.addf %11, %10 : vector<8x256xf32>
    %13 = arith.mulf %7, %12 : vector<8x256xf32>
    %cst_8 = arith.constant 5.000000e-01 : f32
    %14 = vector.broadcast %cst_8 : f32 to vector<8x256xf32>
    %15 = arith.mulf %14, %5 : vector<8x256xf32>
    %16 = math.tanh %13 : vector<8x256xf32>
    %cst_9 = arith.constant 1.000000e+00 : f32
    %17 = vector.broadcast %cst_9 : f32 to vector<8x256xf32>
    %18 = arith.addf %17, %16 : vector<8x256xf32>
    %19 = arith.mulf %15, %18 : vector<8x256xf32>
    %c0_10 = arith.constant 0 : index
    %c0_11 = arith.constant 0 : index
    %20 = vector.load %arg5[%c0_10, %c0_11] : memref<8x256xf32, #tpu.memory_space<vmem>>, vector<8x256xf32>
    tpu.vector_store %arg5[%c0_10, %c0_11], %19 {strides = array<i32>} : memref<8x256xf32, #tpu.memory_space<vmem>>, vector<8x256xf32>,
    return
  }
  func.func @transform_0(%arg0: i32, %arg1: i32) -> (i32, i32) {
    %c0_i32 = arith.constant 0 : i32
    %c0_i32_0 = arith.constant 0 : i32
    return %arg0, %c0_i32 : i32, i32
  }
  func.func @transform_1(%arg0: i32, %arg1: i32) -> (i32, i32) {
    %c0_i32 = arith.constant 0 : i32
    %c0_i32_0 = arith.constant 0 : i32
    return %c0_i32, %arg1 : i32, i32
  }
  func.func @transform_2(%arg0: i32, %arg1: i32) -> (i32, i32) {
    %c0_i32 = arith.constant 0 : i32
    %c0_i32_0 = arith.constant 0 : i32
    return %c0_i32, %arg1 : i32, i32
  }
  func.func @transform_3(%arg0: i32, %arg1: i32) -> (i32, i32) {
    %c0_i32 = arith.constant 0 : i32
    return %arg0, %arg1 : i32, i32
  }
}

</mosaic_0001>

<bundles_post_ra>
// kernel: _linear_new_gelu_packed.1
= control target key start
LH: loop header
LB: loop body
LE: loop exit
PB: predicated region body
PF: predicated region fallthrough
CT: control target
= control target key end

     0   :  { %8 = vsyncpa [#allocation3], 0  ;;  %s578_s12 = smov 0   ;;  %s580_s13 = smov 0   ;;  %s626_s0 = inlined_call_operand.vmem [shape: f32[16,128], index: 0, kind: input, shape index: {}]   ;;  %s627_s1 = inlined_call_operand.hbm [shape: f32[128,256], index: 1, kind: input, shape index: {}]   ;;  %s628_s2 = inlined_call_operand.vmem [shape: f32[1,256], index: 2, kind: input, shape index: {}]   ;;  %s629_s3 = inlined_call_operand.vmem [shape: f32[16,256], index: 3, kind: output, shape index: {}]  }
   0x1   :  { %s582_s14 = smov 0  }
   0x2 LB: > { %s442_s15 = sadd.s32 4294967295, %s553_s14   ;;  %s26_s16 = sadd.s32 1, %s549_s13  ;;  %s553_s14 = sphi %s582_s14, %s14_s14   ;;  %s549_s13 = sphi %s580_s13, %s631_s13   ;;  %s545_s12 = sphi %s578_s12, %s630_s12  }
   0x3   : > { %p28_p0 = scmp.ge.s32.totalorder %s26_s16, 2  ;;  %p444_p1 = scmp.ge.s32.totalorder %s553_s14, 1 }
   0x4   : > { %p137_p2 = scmp.lt.s32.totalorder %s553_s14, 3  ;;  %p464_p4 = scmp.eq.s32.totalorder %s442_s15, 0 }
   0x5   : > { %s633_s16 = smov (%p28_p0, %s26_s16), 0  ;;  %s151_s19 = sshll.u32 %s627_s1, 4  ;;  %s152_s19 = int_to_ptr.hbm [resolvable:$true] %s151_s19 }
   0x6   : > { %p138_p3 = pnand %p444_p1, %p137_p2  ;;  %s555_s20 = smov [#allocation2]  }
   0x7   : > { %s153_s21 = sshll.u32 %s555_s20, 4  ;;  %s556_s22 = smov 256   ;;  %s154_s21 = int_to_ptr.vmem [resolvable:$true] %s153_s21 }
   0x8   : > { %p460_p5 = pneg %p138_p3  ;;  %s557_s23 = smov 16  }
   0x9   : > { %184 = sbr.rel (%p138_p3) target bundleno = 196 (0xc4), region = 32 }
   0xa   : > { %p461_p6 = pnand %p464_p4, %p460_p5 }
   0xc   : > { %463 = dma.hbm_to_vmem [thread:$0]  (!%p461_p6), %s152_s19, 4096, %s154_s21, [#allocation3], %s556_s22, %s556_s22, %s557_s23  }
   0xe   : > { %540 = dma.done.wait (%p464_p4), [#allocation3], 4096  }
   0xf   : > { %542 = vsyncadd (%p464_p4), [#allocation3], 4294963200  ;;  %v267_v0 = vld [vmem:[#allocation2 + $0xf0] sm:$0xff]  ;;  %v268_v1 = vld [vmem:[#allocation2 + $0xf8] sm:$0xff]  ;;  %p216_p7 = scmp.lt.s32.totalorder %s545_s12, 1 }
  0x10   : > { %v265_v2 = vld [vmem:[#allocation2 + $0xe0] sm:$0xff]  ;;  %275 = vmatpush.msra.mxu0 %v267_v0  ;;  %295 = vmatpush.msra.mxu1 %v268_v1  ;;  %v266_v3 = vld [vmem:[#allocation2 + $0xe8] sm:$0xff]  ;;  %v263_v4 = vld [vmem:[#allocation2 + $0xd0] sm:$0xff] }
  0x11   : > { %v264_v5 = vld [vmem:[#allocation2 + $0xd8] sm:$0xff]  ;;  %v261_v6 = vld [vmem:[#allocation2 + $0xc0] sm:$0xff]  ;;  %v262_v7 = vld [vmem:[#allocation2 + $0xc8] sm:$0xff]  ;;  %s635_s12 = smov (!%p216_p7, %s545_s12), 1 }
  0x12   : > { %276 = vmatpush.msra.mxu0 %v265_v2  ;;  %296 = vmatpush.msra.mxu1 %v266_v3  ;;  %v259_v8 = vld [vmem:[#allocation2 + $0xb0] sm:$0xff]  ;;  %v260_v9 = vld [vmem:[#allocation2 + $0xb8] sm:$0xff]  ;;  %v257_v10 = vld [vmem:[#allocation2 + $0xa0] sm:$0xff]  ;;  %s450_s24 = sshll.u32 %s635_s12, 3  ;;  %s455_s30 = sshll.u32 %s635_s12, 4 }
  0x13   : > { %v258_v11 = vld [vmem:[#allocation2 + $0xa8] sm:$0xff]  ;;  %v255_v12 = vld [vmem:[#allocation2 + $0x90] sm:$0xff]  ;;  %v256_v13 = vld [vmem:[#allocation2 + $0x98] sm:$0xff]  ;;  %s219_s27 = scalar_lea.vmem %s626_s0, %s450_s24  ;;  %s234_s6 = scalar_lea.vmem %s629_s3, %s455_s30 }
  0x14   : > { %277 = vmatpush.msra.mxu0 %v263_v4  ;;  %297 = vmatpush.msra.mxu1 %v264_v5  ;;  %v253_v14 = vld [vmem:[#allocation2 + $0x80] sm:$0xff]  ;;  %v254_v15 = vld [vmem:[#allocation2 + $0x88] sm:$0xff]  ;;  %v251_v16 = vld [vmem:[#allocation2 + $0x70] sm:$0xff] }
  0x15   : > { %v252_v17 = vld [vmem:[#allocation2 + $0x78] sm:$0xff]  ;;  %v249_v18 = vld [vmem:[#allocation2 + $0x60] sm:$0xff]  ;;  %v250_v19 = vld [vmem:[#allocation2 + $0x68] sm:$0xff] }
  0x16   : > { %278 = vmatpush.msra.mxu0 %v261_v6  ;;  %298 = vmatpush.msra.mxu1 %v262_v7  ;;  %v247_v20 = vld [vmem:[#allocation2 + $0x50] sm:$0xff]  ;;  %v248_v21 = vld [vmem:[#allocation2 + $0x58] sm:$0xff]  ;;  %v245_v22 = vld [vmem:[#allocation2 + $0x40] sm:$0xff] }
  0x17   : > { %v246_v23 = vld [vmem:[#allocation2 + $0x48] sm:$0xff]  ;;  %v243_v24 = vld [vmem:[#allocation2 + $0x30] sm:$0xff]  ;;  %v244_v25 = vld [vmem:[#allocation2 + $0x38] sm:$0xff] }
  0x18   : > { %279 = vmatpush.msra.mxu0 %v259_v8  ;;  %299 = vmatpush.msra.mxu1 %v260_v9  ;;  %v241_v26 = vld [vmem:[#allocation2 + $0x20] sm:$0xff]  ;;  %v242_v27 = vld [vmem:[#allocation2 + $0x28] sm:$0xff]  ;;  %v239_v28 = vld [vmem:[#allocation2 + $0x10] sm:$0xff] }
  0x19   : > { %v240_v29 = vld [vmem:[#allocation2 + $0x18] sm:$0xff]  ;;  %v237_v30 = vld [vmem:[#allocation2] sm:$0xff]  ;;  %v238_v31 = vld [vmem:[#allocation2 + $0x8] sm:$0xff] }
  0x1a   : > { %280 = vmatpush.msra.mxu0 %v257_v10  ;;  %300 = vmatpush.msra.mxu1 %v258_v11  ;;  %v236_v32 = vld [vmem:[%s219_s27] sm:$0xff] }
  0x1b   : > { %v269_v33 = vld [vmem:[%s628_s2] sm:$0x3] }
  0x1c   : > { %281 = vmatpush.msra.mxu0 %v255_v12  ;;  %301 = vmatpush.msra.mxu1 %v256_v13  ;;  %v271_v34 = vperm.slane %v269_v33, 0  ;;  %v272_v35 = vperm.slane %v269_v33, 1 }
  0x1e   : > { %282 = vmatpush.msra.mxu0 %v253_v14  ;;  %302 = vmatpush.msra.mxu1 %v254_v15 }
  0x20   : > { %283 = vmatpush.msra.mxu0 %v251_v16  ;;  %303 = vmatpush.msra.mxu1 %v252_v17 }
  0x22   : > { %284 = vmatpush.msra.mxu0 %v249_v18  ;;  %304 = vmatpush.msra.mxu1 %v250_v19 }
  0x24   : > { %285 = vmatpush.msra.mxu0 %v247_v20  ;;  %305 = vmatpush.msra.mxu1 %v248_v21 }
  0x26   : > { %286 = vmatpush.msra.mxu0 %v245_v22  ;;  %306 = vmatpush.msra.mxu1 %v246_v23 }
  0x28   : > { %287 = vmatpush.msra.mxu0 %v243_v24  ;;  %307 = vmatpush.msra.mxu1 %v244_v25 }
  0x2a   : > { %288 = vmatpush.msra.mxu0 %v241_v26  ;;  %308 = vmatpush.msra.mxu1 %v242_v27 }
  0x2c   : > { %289 = vmatpush.msra.mxu0 %v239_v28  ;;  %309 = vmatpush.msra.mxu1 %v240_v29 }
  0x2e   : > { %290 = vmatpush.msra.mxu0 %v237_v30  ;;  %310 = vmatpush.msra.mxu1 %v238_v31 }
  0x2f   : > { %291 = vmatmul.f32.vlgmr.msra.gmra.mxu0 %v236_v32  ;;  %311 = vmatmul.f32.vlgmr.msra.gmra.mxu1 %v236_v32 }
  0xac   : > { %v292_v36 = vpop.f32.mrf.mxu0  ;;  %v312_v37 = vpop.f32.mrf.mxu1 }
  0xad   : > { %v293_v38 = vadd.f32 %v292_v36, %v271_v34  ;;  %v313_v39 = vadd.f32 %v312_v37, %v272_v35 }
  0xaf   : > { %v317_v40 = vmul.f32 %v293_v38, %v293_v38  ;;  %v318_v41 = vmul.f32 %v313_v39, %v313_v39  ;;  %v315_v44 = vmul.f32 0.7978846, %v293_v38  ;;  %v316_v46 = vmul.f32 0.7978846, %v313_v39 }
  0xb0   : > { %v325_v52 = vmul.f32 0.5, %v293_v38  ;;  %v326_v54 = vmul.f32 0.5, %v313_v39 }
  0xb1   : > { %v319_v42 = vmul.f32 0.044715, %v317_v40  ;;  %v320_v43 = vmul.f32 0.044715, %v318_v41 }
  0xb3   : > { %v321_v45 = vadd.f32 1.0, %v319_v42  ;;  %v322_v47 = vadd.f32 1.0, %v320_v43 }
  0xb5   : > { %v323_v48 = vmul.f32 %v321_v45, %v315_v44  ;;  %v324_v49 = vmul.f32 %v322_v47, %v316_v46 }
  0xb7   : > { %493 = vtanh.f32 %v323_v48 }
  0xb8   : > { %495 = vtanh.f32 %v324_v49 }
  0xbd   : > { %v494_v50 = vpop.eup %493 }
  0xbe   : > { %v496_v51 = vpop.eup %495  ;;  %v329_v53 = vadd.f32 1.0, %v494_v50 }
  0xbf   : > { %v330_v55 = vadd.f32 1.0, %v496_v51 }
  0xc0   : > { %v331_v56 = vmul.f32 %v329_v53, %v325_v52 }
  0xc1   : > { %v332_v57 = vmul.f32 %v330_v55, %v326_v54 }
  0xc2   : > { %333 = vst [vmem:[%s234_s6] sm:$0xff] %v331_v56 }
  0xc3   : > { %334 = vst [vmem:[%s234_s6 + $0x8] sm:$0xff] %v332_v57 }
  0xc4 PF: > { %s14_s14 = sadd.s32 1, %s553_s14   ;;  %s630_s12 = smov %s549_s13 }
  0xc5   : > { %p11_p8 = scmp.ge.s32.totalorder %s14_s14, 4   ;;  %s631_s13 = smov %s633_s16 }
  0xc7   :  { %13 = sbr.rel (!%p11_p8) target bundleno = 2 (0x2), region = 71 }
  0xcc   :  { %365 = vsyncpa [#allocation3], 1 }
  0xcd   :  { %367 = vsyncpa [#allocation3 + $0x1], 1 }

</bundles_post_ra>
